<compile_context>
chip_gen: v6e
topology: v6e:2x2x1
jax: 0.10.0
libtpu: 0.0.40
codegen_flags: <defaults>
</compile_context>

<pallas_src>
import functools

import jax
import jax.numpy as jnp
from jax.experimental import pallas as pl
from jax.experimental.pallas import tpu as pltpu


def _dwsep_kernel(x_ref, w_ref, b_ref, m_ref, o_ref, *, NB, C, OC, H, W):
    # x_ref: (NB, C, L)      flat-spatial input, zero-padded by W+1 on each side
    # w_ref: (9, OC, C)      fused depthwise*pointwise weights, t = ky*3 + kx
    # b_ref: (OC, 1)         fused bias
    # m_ref: (2, H*W)        column-edge masks: row0 zeroes w==0, row1 zeroes w==W-1
    # o_ref: (NB, OC, H*W)   output in NCHW with spatial flattened (lane-dense)
    HW = H * W
    base = W + 1  # amount of left zero-padding on the flat spatial axis

    # Hoist mask broadcasts out of the tap loop (JAX does not CSE broadcasts).
    m_left = jnp.broadcast_to(m_ref[0:1, :], (C, HW))    # for dx == -1 taps
    m_right = jnp.broadcast_to(m_ref[1:2, :], (C, HW))   # for dx == +1 taps
    b = b_ref[...]                                       # (OC, 1)

    for n in range(NB):          # NB is small; static unroll
        x_n = x_ref[n]           # (C, L)
        acc = jnp.zeros((OC, HW), jnp.float32)
        for dy in (-1, 0, 1):
            for dx in (-1, 0, 1):
                t = (dy + 1) * 3 + (dx + 1)
                start = base + dy * W + dx               # static, always >= 0
                x_t = x_n[:, start:start + HW]           # (C, HW) shifted window
                if dx == -1:
                    x_t = x_t * m_left
                elif dx == 1:
                    x_t = x_t * m_right
                # All FLOPs on the MXU, f32 accumulation.
                acc = acc + jnp.dot(w_ref[t], x_t,
                                    preferred_element_type=jnp.float32)
        o_ref[n] = (acc + b).astype(o_ref.dtype)


def depthwise_conv_pallas(x_nchw, dw_w, dw_b, pw_w, pw_b, *, block_n=None):
    """Forward pass of DepthwiseConv: pw(dw(x)).

    x_nchw: (N, C, H, W) f32 (PyTorch layout)
    dw_w:   (C, 1, 3, 3), dw_b: (C,)
    pw_w:   (OC, C, 1, 1), pw_b: (OC,)
    returns (N, OC, H, W) f32
    """
    N, C, H, W = x_nchw.shape
    OC = pw_w.shape[0]
    HW = H * W
    L = HW + 2 * (W + 1)

    # Batch block: largest divisor of N whose input tile stays under ~2 MiB
    # (amortizes grid overhead; keeps VMEM well under budget, incl. v7x 64 MiB).
    if block_n is None:
        per_elem = C * L * 4
        block_n = max(1, min(N, (2 * 1024 * 1024) // max(per_elem, 1)))
        while N % block_n:
            block_n -= 1
    NB = block_n
    assert N % NB == 0

    # Flatten spatial (free row-major reshape) and zero-pad the flat axis.
    x_flat = jnp.pad(x_nchw.reshape(N, C, HW).astype(jnp.float32),
                     ((0, 0), (0, 0), (W + 1, W + 1)))               # (N, C, L)

    # Fuse depthwise weights into the pointwise matmul (constant-folded by XLA).
    dww = jnp.transpose(dw_w[:, 0, :, :], (1, 2, 0)).reshape(9, C)   # (9, C), t=ky*3+kx
    pww = pw_w[:, :, 0, 0]                                           # (OC, C)
    w_eff = (pww[None, :, :] * dww[:, None, :]).astype(jnp.float32)  # (9, OC, C)
    b_eff = (pww @ dw_b + pw_b).reshape(OC, 1).astype(jnp.float32)   # (OC, 1)
    # TODO(synk): on v6e/v7x, casting x_flat / w_eff to bf16 (keeping f32
    # accumulate) halves HBM traffic; kept f32 here to preserve 1e-4 parity.

    # Column-edge masks for dx = -1 / +1 taps (constant-folded by XLA).
    col = jnp.arange(HW, dtype=jnp.int32) % W
    masks = jnp.stack([(col != 0), (col != W - 1)]).astype(jnp.float32)  # (2, HW)

    kernel = functools.partial(_dwsep_kernel, NB=NB, C=C, OC=OC, H=H, W=W)

    out_flat = pl.pallas_call(
        kernel,
        out_shape=jax.ShapeDtypeStruct((N, OC, HW), jnp.float32),
        grid_spec=pltpu.PrefetchScalarGridSpec(
            num_scalar_prefetch=0,
            grid=(N // NB,),
            in_specs=[
                pl.BlockSpec((NB, C, L), lambda i: (i, 0, 0)),
                pl.BlockSpec((9, OC, C), lambda i: (0, 0, 0)),
                pl.BlockSpec((OC, 1), lambda i: (0, 0)),
                pl.BlockSpec((2, HW), lambda i: (0, 0)),
            ],
            out_specs=pl.BlockSpec((NB, OC, HW), lambda i: (i, 0, 0)),
        ),
        compiler_params=pltpu.CompilerParams(
            dimension_semantics=("parallel",)),
    )(x_flat, w_eff, b_eff, masks)

    return out_flat.reshape(N, OC, H, W)                             # NCHW, no transpose


def _reference(x_nchw, dw_w, dw_b, pw_w, pw_b):
    """Pure-JAX reference (lax conv), NCHW, matches PyTorch semantics."""
    C = x_nchw.shape[1]
    dn = jax.lax.conv_dimension_numbers(x_nchw.shape, dw_w.shape,
                                        ("NCHW", "OIHW", "NCHW"))
    y = jax.lax.conv_general_dilated(
        x_nchw, dw_w, window_strides=(1, 1), padding=((1, 1), (1, 1)),
        dimension_numbers=dn, feature_group_count=C)
    y = y + dw_b.reshape(1, C, 1, 1)
    dn2 = jax.lax.conv_dimension_numbers(y.shape, pw_w.shape,
                                         ("NCHW", "OIHW", "NCHW"))
    z = jax.lax.conv_general_dilated(
        y, pw_w, window_strides=(1, 1), padding=((0, 0), (0, 0)),
        dimension_numbers=dn2)
    return z + pw_b.reshape(1, -1, 1, 1)


if __name__ == "__main__":
    key = jax.random.PRNGKey(0)
    N, C, OC, H, W = 2, 4, 8, 16, 16

    k_x, k_dww, k_dwb, k_pww, k_pwb = jax.random.split(key, 5)
    x = jax.random.normal(k_x, (N, C, H, W), jnp.float32)
    # Deterministic parameter init (shapes follow nn.Conv2d in __init__).
    dw_w = jax.random.normal(k_dww, (C, 1, 3, 3), jnp.float32) * 0.1
    dw_b = jax.random.normal(k_dwb, (C,), jnp.float32) * 0.1
    pw_w = jax.random.normal(k_pww, (OC, C, 1, 1), jnp.float32) * 0.1
    pw_b = jax.random.normal(k_pwb, (OC,), jnp.float32) * 0.1

    out = depthwise_conv_pallas(x, dw_w, dw_b, pw_w, pw_b)
    out = jax.block_until_ready(out)

    ref = _reference(x, dw_w, dw_b, pw_w, pw_b)
    assert out.shape == (N, OC, H, W)
    assert jnp.allclose(out, ref, atol=1e-4, rtol=1e-4), \
        float(jnp.max(jnp.abs(out - ref)))

    print("KERNEL_OK")
</pallas_src>

<mosaic_0001>
module attributes {stable_mosaic.version = 11 : i64} {
  func.func @_dwsep_kernel(%arg0: i32, %arg1: memref<2x4x290xf32, #tpu.memory_space<vmem>>, %arg2: memref<9x8x4xf32, #tpu.memory_space<vmem>>, %arg3: memref<8x1xf32, #tpu.memory_space<vmem>>, %arg4: memref<2x256xf32, #tpu.memory_space<vmem>>, %arg5: memref<2x8x256xf32, #tpu.memory_space<vmem>>) attributes {dimension_semantics = [#tpu.dimension_semantics<parallel>], iteration_bounds = array<i64: 1>, scalar_prefetch = 0 : i64, scratch_operands = 0 : i64, tpu.core_type = #tpu.core_type<tc>, window_params = [{transform_indices = @transform_0, window_bounds = array<i64: 2, 4, 290>}, {pipeline_mode = #tpu.pipeline_mode<synchronous>, transform_indices = @transform_1, window_bounds = array<i64: 9, 8, 4>}, {pipeline_mode = #tpu.pipeline_mode<synchronous>, transform_indices = @transform_2, window_bounds = array<i64: 8, 1>}, {pipeline_mode = #tpu.pipeline_mode<synchronous>, transform_indices = @transform_3, window_bounds = array<i64: 2, 256>}, {transform_indices = @transform_4, window_bounds = array<i64: 2, 8, 256>}]} {
    %c0 = arith.constant 0 : index
    %c0_0 = arith.constant 0 : index
    %0 = vector.load %arg4[%c0, %c0_0] : memref<2x256xf32, #tpu.memory_space<vmem>>, vector<1x256xf32>
    %1 = vector.shape_cast %0 : vector<1x256xf32> to vector<1x256xf32>
    %2 = vector.broadcast %1 : vector<1x256xf32> to vector<4x256xf32>
    %c1 = arith.constant 1 : index
    %c0_1 = arith.constant 0 : index
    %3 = vector.load %arg4[%c1, %c0_1] : memref<2x256xf32, #tpu.memory_space<vmem>>, vector<1x256xf32>
    %4 = vector.shape_cast %3 : vector<1x256xf32> to vector<1x256xf32>
    %5 = vector.broadcast %4 : vector<1x256xf32> to vector<4x256xf32>
    %c0_2 = arith.constant 0 : index
    %c0_3 = arith.constant 0 : index
    %6 = vector.load %arg3[%c0_2, %c0_3] : memref<8x1xf32, #tpu.memory_space<vmem>>, vector<8x1xf32>
    %c0_4 = arith.constant 0 : index
    %c0_5 = arith.constant 0 : index
    %c0_6 = arith.constant 0 : index
    %7 = vector.load %arg1[%c0_4, %c0_5, %c0_6] : memref<2x4x290xf32, #tpu.memory_space<vmem>>, vector<1x4x290xf32>
    %8 = vector.shape_cast %7 : vector<1x4x290xf32> to vector<4x290xf32>
    %cst = arith.constant 0.000000e+00 : f32
    %9 = vector.broadcast %cst : f32 to vector<8x256xf32>
    %10 = vector.extract_strided_slice %8 {offsets = [0, 0], sizes = [4, 256], strides = [1, 1]} : vector<4x290xf32> to vector<4x256xf32>
    %11 = arith.mulf %10, %2 : vector<4x256xf32>
    %c0_7 = arith.constant 0 : index
    %c0_8 = arith.constant 0 : index
    %c0_9 = arith.constant 0 : index
    %12 = vector.load %arg2[%c0_7, %c0_8, %c0_9] : memref<9x8x4xf32, #tpu.memory_space<vmem>>, vector<1x8x4xf32>
    %13 = vector.shape_cast %12 : vector<1x8x4xf32> to vector<8x4xf32>
    %cst_10 = arith.constant dense<0.000000e+00> : vector<8x256xf32>
    %14 = tpu.matmul %13, %11, %cst_10 {dimension_numbers = #tpu.dot_dimension_numbers<[1], [0], [0], [1], [0, 0, 1, 1], [], []>} : vector<8x4xf32>, vector<4x256xf32>, vector<8x256xf32> -> vector<8x256xf32>
    %15 = arith.addf %9, %14 : vector<8x256xf32>
    %16 = vector.extract_strided_slice %8 {offsets = [0, 1], sizes = [4, 256], strides = [1, 1]} : vector<4x290xf32> to vector<4x256xf32>
    %c1_11 = arith.constant 1 : index
    %c0_12 = arith.constant 0 : index
    %c0_13 = arith.constant 0 : index
    %17 = vector.load %arg2[%c1_11, %c0_12, %c0_13] : memref<9x8x4xf32, #tpu.memory_space<vmem>>, vector<1x8x4xf32>
    %18 = vector.shape_cast %17 : vector<1x8x4xf32> to vector<8x4xf32>
    %cst_14 = arith.constant dense<0.000000e+00> : vector<8x256xf32>
    %19 = tpu.matmul %18, %16, %cst_14 {dimension_numbers = #tpu.dot_dimension_numbers<[1], [0], [0], [1], [0, 0, 1, 1], [], []>} : vector<8x4xf32>, vector<4x256xf32>, vector<8x256xf32> -> vector<8x256xf32>
    %20 = arith.addf %15, %19 : vector<8x256xf32>
    %21 = vector.extract_strided_slice %8 {offsets = [0, 2], sizes = [4, 256], strides = [1, 1]} : vector<4x290xf32> to vector<4x256xf32>
    %22 = arith.mulf %21, %5 : vector<4x256xf32>
    %c2 = arith.constant 2 : index
    %c0_15 = arith.constant 0 : index
    %c0_16 = arith.constant 0 : index
    %23 = vector.load %arg2[%c2, %c0_15, %c0_16] : memref<9x8x4xf32, #tpu.memory_space<vmem>>, vector<1x8x4xf32>
    %24 = vector.shape_cast %23 : vector<1x8x4xf32> to vector<8x4xf32>
    %cst_17 = arith.constant dense<0.000000e+00> : vector<8x256xf32>
    %25 = tpu.matmul %24, %22, %cst_17 {dimension_numbers = #tpu.dot_dimension_numbers<[1], [0], [0], [1], [0, 0, 1, 1], [], []>} : vector<8x4xf32>, vector<4x256xf32>, vector<8x256xf32> -> vector<8x256xf32>
    %26 = arith.addf %20, %25 : vector<8x256xf32>
    %27 = vector.extract_strided_slice %8 {offsets = [0, 16], sizes = [4, 256], strides = [1, 1]} : vector<4x290xf32> to vector<4x256xf32>
    %28 = arith.mulf %27, %2 : vector<4x256xf32>
    %c3 = arith.constant 3 : index
    %c0_18 = arith.constant 0 : index
    %c0_19 = arith.constant 0 : index
    %29 = vector.load %arg2[%c3, %c0_18, %c0_19] : memref<9x8x4xf32, #tpu.memory_space<vmem>>, vector<1x8x4xf32>
    %30 = vector.shape_cast %29 : vector<1x8x4xf32> to vector<8x4xf32>
    %cst_20 = arith.constant dense<0.000000e+00> : vector<8x256xf32>
    %31 = tpu.matmul %30, %28, %cst_20 {dimension_numbers = #tpu.dot_dimension_numbers<[1], [0], [0], [1], [0, 0, 1, 1], [], []>} : vector<8x4xf32>, vector<4x256xf32>, vector<8x256xf32> -> vector<8x256xf32>
    %32 = arith.addf %26, %31 : vector<8x256xf32>
    %33 = vector.extract_strided_slice %8 {offsets = [0, 17], sizes = [4, 256], strides = [1, 1]} : vector<4x290xf32> to vector<4x256xf32>
    %c4 = arith.constant 4 : index
    %c0_21 = arith.constant 0 : index
    %c0_22 = arith.constant 0 : index
    %34 = vector.load %arg2[%c4, %c0_21, %c0_22] : memref<9x8x4xf32, #tpu.memory_space<vmem>>, vector<1x8x4xf32>
    %35 = vector.shape_cast %34 : vector<1x8x4xf32> to vector<8x4xf32>
    %cst_23 = arith.constant dense<0.000000e+00> : vector<8x256xf32>
    %36 = tpu.matmul %35, %33, %cst_23 {dimension_numbers = #tpu.dot_dimension_numbers<[1], [0], [0], [1], [0, 0, 1, 1], [], []>} : vector<8x4xf32>, vector<4x256xf32>, vector<8x256xf32> -> vector<8x256xf32>
    %37 = arith.addf %32, %36 : vector<8x256xf32>
    %38 = vector.extract_strided_slice %8 {offsets = [0, 18], sizes = [4, 256], strides = [1, 1]} : vector<4x290xf32> to vector<4x256xf32>
    %39 = arith.mulf %38, %5 : vector<4x256xf32>
    %c5 = arith.constant 5 : index
    %c0_24 = arith.constant 0 : index
    %c0_25 = arith.constant 0 : index
    %40 = vector.load %arg2[%c5, %c0_24, %c0_25] : memref<9x8x4xf32, #tpu.memory_space<vmem>>, vector<1x8x4xf32>
    %41 = vector.shape_cast %40 : vector<1x8x4xf32> to vector<8x4xf32>
    %cst_26 = arith.constant dense<0.000000e+00> : vector<8x256xf32>
    %42 = tpu.matmul %41, %39, %cst_26 {dimension_numbers = #tpu.dot_dimension_numbers<[1], [0], [0], [1], [0, 0, 1, 1], [], []>} : vector<8x4xf32>, vector<4x256xf32>, vector<8x256xf32> -> vector<8x256xf32>
    %43 = arith.addf %37, %42 : vector<8x256xf32>
    %44 = vector.extract_strided_slice %8 {offsets = [0, 32], sizes = [4, 256], strides = [1, 1]} : vector<4x290xf32> to vector<4x256xf32>
    %45 = arith.mulf %44, %2 : vector<4x256xf32>
    %c6 = arith.constant 6 : index
    %c0_27 = arith.constant 0 : index
    %c0_28 = arith.constant 0 : index
    %46 = vector.load %arg2[%c6, %c0_27, %c0_28] : memref<9x8x4xf32, #tpu.memory_space<vmem>>, vector<1x8x4xf32>
    %47 = vector.shape_cast %46 : vector<1x8x4xf32> to vector<8x4xf32>
    %cst_29 = arith.constant dense<0.000000e+00> : vector<8x256xf32>
    %48 = tpu.matmul %47, %45, %cst_29 {dimension_numbers = #tpu.dot_dimension_numbers<[1], [0], [0], [1], [0, 0, 1, 1], [], []>} : vector<8x4xf32>, vector<4x256xf32>, vector<8x256xf32> -> vector<8x256xf32>
    %49 = arith.addf %43, %48 : vector<8x256xf32>
    %50 = vector.extract_strided_slice %8 {offsets = [0, 33], sizes = [4, 256], strides = [1, 1]} : vector<4x290xf32> to vector<4x256xf32>
    %c7 = arith.constant 7 : index
    %c0_30 = arith.constant 0 : index
    %c0_31 = arith.constant 0 : index
    %51 = vector.load %arg2[%c7, %c0_30, %c0_31] : memref<9x8x4xf32, #tpu.memory_space<vmem>>, vector<1x8x4xf32>
    %52 = vector.shape_cast %51 : vector<1x8x4xf32> to vector<8x4xf32>
    %cst_32 = arith.constant dense<0.000000e+00> : vector<8x256xf32>
    %53 = tpu.matmul %52, %50, %cst_32 {dimension_numbers = #tpu.dot_dimension_numbers<[1], [0], [0], [1], [0, 0, 1, 1], [], []>} : vector<8x4xf32>, vector<4x256xf32>, vector<8x256xf32> -> vector<8x256xf32>
    %54 = arith.addf %49, %53 : vector<8x256xf32>
    %55 = vector.extract_strided_slice %8 {offsets = [0, 34], sizes = [4, 256], strides = [1, 1]} : vector<4x290xf32> to vector<4x256xf32>
    %56 = arith.mulf %55, %5 : vector<4x256xf32>
    %c8 = arith.constant 8 : index
    %c0_33 = arith.constant 0 : index
    %c0_34 = arith.constant 0 : index
    %57 = vector.load %arg2[%c8, %c0_33, %c0_34] : memref<9x8x4xf32, #tpu.memory_space<vmem>>, vector<1x8x4xf32>
    %58 = vector.shape_cast %57 : vector<1x8x4xf32> to vector<8x4xf32>
    %cst_35 = arith.constant dense<0.000000e+00> : vector<8x256xf32>
    %59 = tpu.matmul %58, %56, %cst_35 {dimension_numbers = #tpu.dot_dimension_numbers<[1], [0], [0], [1], [0, 0, 1, 1], [], []>} : vector<8x4xf32>, vector<4x256xf32>, vector<8x256xf32> -> vector<8x256xf32>
    %60 = arith.addf %54, %59 : vector<8x256xf32>
    %61 = vector.broadcast %6 : vector<8x1xf32> to vector<8x256xf32>
    %62 = arith.addf %60, %61 : vector<8x256xf32>
    %c0_36 = arith.constant 0 : index
    %c0_37 = arith.constant 0 : index
    %c0_38 = arith.constant 0 : index
    %63 = vector.load %arg5[%c0_36, %c0_37, %c0_38] : memref<2x8x256xf32, #tpu.memory_space<vmem>>, vector<1x8x256xf32>
    %64 = vector.shape_cast %63 : vector<1x8x256xf32> to vector<8x256xf32>
    %65 = vector.shape_cast %62 : vector<8x256xf32> to vector<1x8x256xf32>
    tpu.vector_store %arg5[%c0_36, %c0_37, %c0_38], %65 {strides = array<i32>} : memref<2x8x256xf32, #tpu.memory_space<vmem>>, vector<1x8x256xf32>,
    %c1_39 = arith.constant 1 : index
    %c0_40 = arith.constant 0 : index
    %c0_41 = arith.constant 0 : index
    %66 = vector.load %arg1[%c1_39, %c0_40, %c0_41] : memref<2x4x290xf32, #tpu.memory_space<vmem>>, vector<1x4x290xf32>
    %67 = vector.shape_cast %66 : vector<1x4x290xf32> to vector<4x290xf32>
    %cst_42 = arith.constant 0.000000e+00 : f32
    %68 = vector.broadcast %cst_42 : f32 to vector<8x256xf32>
    %69 = vector.extract_strided_slice %67 {offsets = [0, 0], sizes = [4, 256], strides = [1, 1]} : vector<4x290xf32> to vector<4x256xf32>
    %70 = arith.mulf %69, %2 : vector<4x256xf32>
    %c0_43 = arith.constant 0 : index
    %c0_44 = arith.constant 0 : index
    %c0_45 = arith.constant 0 : index
    %71 = vector.load %arg2[%c0_43, %c0_44, %c0_45] : memref<9x8x4xf32, #tpu.memory_space<vmem>>, vector<1x8x4xf32>
    %72 = vector.shape_cast %71 : vector<1x8x4xf32> to vector<8x4xf32>
    %cst_46 = arith.constant dense<0.000000e+00> : vector<8x256xf32>
    %73 = tpu.matmul %72, %70, %cst_46 {dimension_numbers = #tpu.dot_dimension_numbers<[1], [0], [0], [1], [0, 0, 1, 1], [], []>} : vector<8x4xf32>, vector<4x256xf32>, vector<8x256xf32> -> vector<8x256xf32>
    %74 = arith.addf %68, %73 : vector<8x256xf32>
    %75 = vector.extract_strided_slice %67 {offsets = [0, 1], sizes = [4, 256], strides = [1, 1]} : vector<4x290xf32> to vector<4x256xf32>
    %c1_47 = arith.constant 1 : index
    %c0_48 = arith.constant 0 : index
    %c0_49 = arith.constant 0 : index
    %76 = vector.load %arg2[%c1_47, %c0_48, %c0_49] : memref<9x8x4xf32, #tpu.memory_space<vmem>>, vector<1x8x4xf32>
    %77 = vector.shape_cast %76 : vector<1x8x4xf32> to vector<8x4xf32>
    %cst_50 = arith.constant dense<0.000000e+00> : vector<8x256xf32>
    %78 = tpu.matmul %77, %75, %cst_50 {dimension_numbers = #tpu.dot_dimension_numbers<[1], [0], [0], [1], [0, 0, 1, 1], [], []>} : vector<8x4xf32>, vector<4x256xf32>, vector<8x256xf32> -> vector<8x256xf32>
    %79 = arith.addf %74, %78 : vector<8x256xf32>
    %80 = vector.extract_strided_slice %67 {offsets = [0, 2], sizes = [4, 256], strides = [1, 1]} : vector<4x290xf32> to vector<4x256xf32>
    %81 = arith.mulf %80, %5 : vector<4x256xf32>
    %c2_51 = arith.constant 2 : index
    %c0_52 = arith.constant 0 : index
    %c0_53 = arith.constant 0 : index
    %82 = vector.load %arg2[%c2_51, %c0_52, %c0_53] : memref<9x8x4xf32, #tpu.memory_space<vmem>>, vector<1x8x4xf32>
    %83 = vector.shape_cast %82 : vector<1x8x4xf32> to vector<8x4xf32>
    %cst_54 = arith.constant dense<0.000000e+00> : vector<8x256xf32>
    %84 = tpu.matmul %83, %81, %cst_54 {dimension_numbers = #tpu.dot_dimension_numbers<[1], [0], [0], [1], [0, 0, 1, 1], [], []>} : vector<8x4xf32>, vector<4x256xf32>, vector<8x256xf32> -> vector<8x256xf32>
    %85 = arith.addf %79, %84 : vector<8x256xf32>
    %86 = vector.extract_strided_slice %67 {offsets = [0, 16], sizes = [4, 256], strides = [1, 1]} : vector<4x290xf32> to vector<4x256xf32>
    %87 = arith.mulf %86, %2 : vector<4x256xf32>
    %c3_55 = arith.constant 3 : index
    %c0_56 = arith.constant 0 : index
    %c0_57 = arith.constant 0 : index
    %88 = vector.load %arg2[%c3_55, %c0_56, %c0_57] : memref<9x8x4xf32, #tpu.memory_space<vmem>>, vector<1x8x4xf32>
    %89 = vector.shape_cast %88 : vector<1x8x4xf32> to vector<8x4xf32>
    %cst_58 = arith.constant dense<0.000000e+00> : vector<8x256xf32>
    %90 = tpu.matmul %89, %87, %cst_58 {dimension_numbers = #tpu.dot_dimension_numbers<[1], [0], [0], [1], [0, 0, 1, 1], [], []>} : vector<8x4xf32>, vector<4x256xf32>, vector<8x256xf32> -> vector<8x256xf32>
    %91 = arith.addf %85, %90 : vector<8x256xf32>
    %92 = vector.extract_strided_slice %67 {offsets = [0, 17], sizes = [4, 256], strides = [1, 1]} : vector<4x290xf32> to vector<4x256xf32>
    %c4_59 = arith.constant 4 : index
    %c0_60 = arith.constant 0 : index
    %c0_61 = arith.constant 0 : index
    %93 = vector.load %arg2[%c4_59, %c0_60, %c0_61] : memref<9x8x4xf32, #tpu.memory_space<vmem>>, vector<1x8x4xf32>
    %94 = vector.shape_cast %93 : vector<1x8x4xf32> to vector<8x4xf32>
    %cst_62 = arith.constant dense<0.000000e+00> : vector<8x256xf32>
    %95 = tpu.matmul %94, %92, %cst_62 {dimension_numbers = #tpu.dot_dimension_numbers<[1], [0], [0], [1], [0, 0, 1, 1], [], []>} : vector<8x4xf32>, vector<4x256xf32>, vector<8x256xf32> -> vector<8x256xf32>
    %96 = arith.addf %91, %95 : vector<8x256xf32>
    %97 = vector.extract_strided_slice %67 {offsets = [0, 18], sizes = [4, 256], strides = [1, 1]} : vector<4x290xf32> to vector<4x256xf32>
    %98 = arith.mulf %97, %5 : vector<4x256xf32>
    %c5_63 = arith.constant 5 : index
    %c0_64 = arith.constant 0 : index
    %c0_65 = arith.constant 0 : index
    %99 = vector.load %arg2[%c5_63, %c0_64, %c0_65] : memref<9x8x4xf32, #tpu.memory_space<vmem>>, vector<1x8x4xf32>
    %100 = vector.shape_cast %99 : vector<1x8x4xf32> to vector<8x4xf32>
    %cst_66 = arith.constant dense<0.000000e+00> : vector<8x256xf32>
    %101 = tpu.matmul %100, %98, %cst_66 {dimension_numbers = #tpu.dot_dimension_numbers<[1], [0], [0], [1], [0, 0, 1, 1], [], []>} : vector<8x4xf32>, vector<4x256xf32>, vector<8x256xf32> -> vector<8x256xf32>
    %102 = arith.addf %96, %101 : vector<8x256xf32>
    %103 = vector.extract_strided_slice %67 {offsets = [0, 32], sizes = [4, 256], strides = [1, 1]} : vector<4x290xf32> to vector<4x256xf32>
    %104 = arith.mulf %103, %2 : vector<4x256xf32>
    %c6_67 = arith.constant 6 : index
    %c0_68 = arith.constant 0 : index
    %c0_69 = arith.constant 0 : index
    %105 = vector.load %arg2[%c6_67, %c0_68, %c0_69] : memref<9x8x4xf32, #tpu.memory_space<vmem>>, vector<1x8x4xf32>
    %106 = vector.shape_cast %105 : vector<1x8x4xf32> to vector<8x4xf32>
    %cst_70 = arith.constant dense<0.000000e+00> : vector<8x256xf32>
    %107 = tpu.matmul %106, %104, %cst_70 {dimension_numbers = #tpu.dot_dimension_numbers<[1], [0], [0], [1], [0, 0, 1, 1], [], []>} : vector<8x4xf32>, vector<4x256xf32>, vector<8x256xf32> -> vector<8x256xf32>
    %108 = arith.addf %102, %107 : vector<8x256xf32>
    %109 = vector.extract_strided_slice %67 {offsets = [0, 33], sizes = [4, 256], strides = [1, 1]} : vector<4x290xf32> to vector<4x256xf32>
    %c7_71 = arith.constant 7 : index
    %c0_72 = arith.constant 0 : index
    %c0_73 = arith.constant 0 : index
    %110 = vector.load %arg2[%c7_71, %c0_72, %c0_73] : memref<9x8x4xf32, #tpu.memory_space<vmem>>, vector<1x8x4xf32>
    %111 = vector.shape_cast %110 : vector<1x8x4xf32> to vector<8x4xf32>
    %cst_74 = arith.constant dense<0.000000e+00> : vector<8x256xf32>
    %112 = tpu.matmul %111, %109, %cst_74 {dimension_numbers = #tpu.dot_dimension_numbers<[1], [0], [0], [1], [0, 0, 1, 1], [], []>} : vector<8x4xf32>, vector<4x256xf32>, vector<8x256xf32> -> vector<8x256xf32>
    %113 = arith.addf %108, %112 : vector<8x256xf32>
    %114 = vector.extract_strided_slice %67 {offsets = [0, 34], sizes = [4, 256], strides = [1, 1]} : vector<4x290xf32> to vector<4x256xf32>
    %115 = arith.mulf %114, %5 : vector<4x256xf32>
    %c8_75 = arith.constant 8 : index
    %c0_76 = arith.constant 0 : index
    %c0_77 = arith.constant 0 : index
    %116 = vector.load %arg2[%c8_75, %c0_76, %c0_77] : memref<9x8x4xf32, #tpu.memory_space<vmem>>, vector<1x8x4xf32>
    %117 = vector.shape_cast %116 : vector<1x8x4xf32> to vector<8x4xf32>
    %cst_78 = arith.constant dense<0.000000e+00> : vector<8x256xf32>
    %118 = tpu.matmul %117, %115, %cst_78 {dimension_numbers = #tpu.dot_dimension_numbers<[1], [0], [0], [1], [0, 0, 1, 1], [], []>} : vector<8x4xf32>, vector<4x256xf32>, vector<8x256xf32> -> vector<8x256xf32>
    %119 = arith.addf %113, %118 : vector<8x256xf32>
    %120 = vector.broadcast %6 : vector<8x1xf32> to vector<8x256xf32>
    %121 = arith.addf %119, %120 : vector<8x256xf32>
    %c1_79 = arith.constant 1 : index
    %c0_80 = arith.constant 0 : index
    %c0_81 = arith.constant 0 : index
    %122 = vector.load %arg5[%c1_79, %c0_80, %c0_81] : memref<2x8x256xf32, #tpu.memory_space<vmem>>, vector<1x8x256xf32>
    %123 = vector.shape_cast %122 : vector<1x8x256xf32> to vector<8x256xf32>
    %124 = vector.shape_cast %121 : vector<8x256xf32> to vector<1x8x256xf32>
    tpu.vector_store %arg5[%c1_79, %c0_80, %c0_81], %124 {strides = array<i32>} : memref<2x8x256xf32, #tpu.memory_space<vmem>>, vector<1x8x256xf32>,
    return
  }
  func.func @transform_0(%arg0: i32) -> (i32, i32, i32) {
    %c0_i32 = arith.constant 0 : i32
    %c0_i32_0 = arith.constant 0 : i32
    %c0_i32_1 = arith.constant 0 : i32
    return %arg0, %c0_i32, %c0_i32_0 : i32, i32, i32
  }
  func.func @transform_1(%arg0: i32) -> (i32, i32, i32) {
    %c0_i32 = arith.constant 0 : i32
    %c0_i32_0 = arith.constant 0 : i32
    %c0_i32_1 = arith.constant 0 : i32
    %c0_i32_2 = arith.constant 0 : i32
    return %c0_i32, %c0_i32_0, %c0_i32_1 : i32, i32, i32
  }
  func.func @transform_2(%arg0: i32) -> (i32, i32) {
    %c0_i32 = arith.constant 0 : i32
    %c0_i32_0 = arith.constant 0 : i32
    %c0_i32_1 = arith.constant 0 : i32
    return %c0_i32, %c0_i32_0 : i32, i32
  }
  func.func @transform_3(%arg0: i32) -> (i32, i32) {
    %c0_i32 = arith.constant 0 : i32
    %c0_i32_0 = arith.constant 0 : i32
    %c0_i32_1 = arith.constant 0 : i32
    return %c0_i32, %c0_i32_0 : i32, i32
  }
  func.func @transform_4(%arg0: i32) -> (i32, i32, i32) {
    %c0_i32 = arith.constant 0 : i32
    %c0_i32_0 = arith.constant 0 : i32
    %c0_i32_1 = arith.constant 0 : i32
    return %arg0, %c0_i32, %c0_i32_0 : i32, i32, i32
  }
}

</mosaic_0001>

<bundles_post_ra>
// kernel: tpu_custom_call.1
= control target key start
LH: loop header
LB: loop body
LE: loop exit
PB: predicated region body
PF: predicated region fallthrough
CT: control target
= control target key end

     0   :  { %v20_v1 = vlaneseq  ;;  %s1887_s17 = smov 127   ;;  %s2271_s0 = inlined_call_operand.vmem [shape: f32[2,4,290], index: 0, kind: input, shape index: {}]   ;;  %s2272_s1 = inlined_call_operand.vmem [shape: f32[9,8,4], index: 1, kind: input, shape index: {}]   ;;  %s2273_s2 = inlined_call_operand.vmem [shape: f32[8,1], index: 2, kind: input, shape index: {}]   ;;  %s2274_s3 = inlined_call_operand.vmem [shape: f32[2,256], index: 3, kind: input, shape index: {}]   ;;  %s2275_s4 = inlined_call_operand.hbm [shape: f32[2,8,256], index: 4, kind: output, shape index: {}]  }
   0x1   :  { %v1932_v0 = vld [vmem:[%s2271_s0] sm:$0xff] }
   0x2   :  { %v50_v2 = vcombine.high %v1932_v0, %v1932_v0  ;;  %v21_v3 = vshrl.u32 %v20_v1, 7  ;;  %v1771_v4 = vld [vmem:[%s2274_s3 + $0x1] ss:$2 sm:$0x3] }
   0x3   :  { %v18_v5 = vld [vmem:[%s2274_s3] ss:$2 sm:$0x3] }
   0x4   :  { %53 = vrot.lane.b32.xlu1 %v50_v2, %s1887_s17  ;;  %v22_v6 = vsub.s32 0, %v21_v3  ;;  %v26_v7 = vsub.s32 1, %v21_v3 }
   0x5   :  { %9 = vsyncpa [#allocation3], 0  ;;  %s1888_s22 = smov 18   ;;  %s1889_s23 = smov 2   ;;  %v41_v14 = vld [vmem:[%s2271_s0 + $0x8] sm:$0xf] }
   0x6   :  { %v34_v8 = vrot.slane %v1771_v4, %v22_v6  ;;  %v38_v9 = vrot.slane %v1771_v4, %v26_v7  ;;  %v23_v10 = vrot.slane %v18_v5, %v22_v6  ;;  %v27_v11 = vrot.slane %v18_v5, %v26_v7  ;;  %s1890_s24 = smov 32   ;;  %s1891_s25 = smov 16   ;;  %v1958_v15 = vld [vmem:[%s2271_s0 + $0xc] sm:$0xff]  ;;  %v1973_v17 = vld [vmem:[%s2271_s0 + $0x14] sm:$0xf]  ;;  %v2017_v51 = vld [vmem:[%s2272_s1] sm:$0xff] }
   0x7   :  { %s1892_s3 = smov 34   ;;  %s1893_s28 = smov 111   ;;  %v1965_v16 = vcombine.high %v1958_v15, %v1958_v15  ;;  %vm57_vm0 = vcmask 1039360   ;;  %vm64_vm1 = vcmask 1043456   ;;  %vm327_vm2 = vcmask 130048   ;;  %v2029_v54 = vld [vmem:[%s2272_s1 + $0x8] sm:$0xff] }
   0x8   :  { %v220_v12 = vcombine.low %v34_v8, %v38_v9  ;;  %v1943_v13 = vcombine.low %v23_v10, %v27_v11  ;;  %s1894_s29 = smov 95   ;;  %s1895_s0 = smov 126   ;;  %vm521_vm3 = vcmask 146432   ;;  %vm224_vm4 = vcmask 15360   ;;  %v39_v9 = vld [vmem:[%s2273_s2] sm:$0xff] }
   0x9   :  { %s1896_s8 = smov 96   ;;  %s1897_s9 = smov 112   ;;  %v1900_v46 = vmov 0.0   ;;  %vm624_vm5 = vcmask 261120   ;;  %vm60_vm6 = vcmask 31744   ;;  %vm818_vm7 = vcmask 277504  }
   0xa   :  { %518 = vrot.lane.b32.xlu1 %v220_v12, %s1888_s22  ;;  %221 = vrot.lane.b32.xlu0 %v220_v12, %s1889_s23  ;;  %s1898_s10 = smov 110   ;;  %s1899_s11 = smov 94   ;;  %v44_v43 = vmul.f32 %v1943_v13, %v1932_v0  ;;  %v1901_v8 = vmov 0   ;;  %vm344_vm8 = vcmask 916480   ;;  %vm538_vm9 = vcmask 900096  }
   0xb   :  { %213 = vmatprep.mubr.f32.mxu1 %v1900_v46  ;;  %133 = vmatprep.mubr.f32.mxu0 %v1900_v46  ;;  %vm241_vm10 = vcmask 1031168   ;;  %vm435_vm11 = vcmask 908288   ;;  %vm732_vm12 = vcmask 777216   ;;  %vm641_vm13 = vcmask 785408  }
   0xc   :  { %v141_v47 = vcombine.high %v44_v43, %v44_v43  ;;  %1861 = vset.pattern.permute.xlu1 %v1901_v8  ;;  %1862 = vset.pattern.permute.xlu0 %v1901_v8  ;;  %vm835_vm14 = vcmask 769024  }
   0xe   :  { %621 = vrot.lane.b32.xlu1 %v1943_v13, %s1890_s24  ;;  %324 = vrot.lane.b32.xlu0 %v1943_v13, %s1891_s25 }
   0xf   :  { %1776 = vmatprep.subr.msk.mxu1 %vm64_vm1, %v141_v47 }
  0x10   :  { %1777 = vmatpush1.msk.msra.mxu1 %vm64_vm1, %v44_v43 }
  0x11   :  { %1778 = vmatmul.mubr.msk.f32.vlgmr.msra.gmra.mxu1 %vm60_vm6, %v2017_v51 }
  0x12   :  { %51 = vrot.lane.b32.xlu1 %v1932_v0, %s1887_s17  ;;  %815 = vrot.lane.b32.xlu0 %v220_v12, %s1892_s3 }
  0x13   :  { %418 = vmatprep.mubr.f32.mxu1 %v1900_v46 }
  0x16   :  { %55 = vrot.lane.b32.xlu0 %v41_v14, %s1887_s17  ;;  %433 = vrot.lane.b32.xlu1 %v41_v14, %s1893_s28 }
  0x1a   :  { %431 = vrot.lane.b32.xlu0 %v50_v2, %s1893_s28  ;;  %728 = vrot.lane.b32.xlu1 %v50_v2, %s1894_s29 }
  0x1e   :  { %429 = vrot.lane.b32.xlu0 %v1932_v0, %s1893_s28  ;;  %726 = vrot.lane.b32.xlu1 %v1932_v0, %s1894_s29 }
  0x22   :  { %730 = vrot.lane.b32.xlu0 %v41_v14, %s1894_s29  ;;  %938 = vrot.lane.b32.xlu1 %v1965_v16, %s1887_s17 }
  0x26   :  { %940 = vrot.lane.b32.xlu0 %v1973_v17, %s1887_s17  ;;  %936 = vrot.lane.b32.xlu1 %v1958_v15, %s1887_s17 }
  0x2a   :  { %1293 = vrot.lane.b32.xlu0 %v1965_v16, %s1893_s28  ;;  %1295 = vrot.lane.b32.xlu1 %v1973_v17, %s1893_s28 }
  0x2e   :  { %1291 = vrot.lane.b32.xlu0 %v1958_v15, %s1893_s28 }
  0x76   :  { %v54_v18 = vpop.permute.xlu1 %53 }
  0x7c   :  { %v519_v19 = vpop.permute.xlu1 %518  ;;  %v222_v20 = vpop.permute.xlu0 %221 }
  0x7d   :  { %v223_v21 = vrot.slane %v222_v20, 4  ;;  %v520_v27 = vrot.slane %v519_v19, 4 }
  0x7f   :  { %v229_v22 = vmul.f32 %v223_v21, %v41_v14  ;;  %v526_v32 = vmul.f32 %v520_v27, %v41_v14  ;;  %v1103_v39 = vmul.f32 %v1973_v17, %v223_v21  ;;  %v1380_v42 = vmul.f32 %v1973_v17, %v520_v27 }
  0x80   :  { %v622_v23 = vpop.permute.xlu1 %621  ;;  %v325_v24 = vpop.permute.xlu0 %324  ;;  %v522_v44 = vsel %vm521_vm3, %v520_v27, %v519_v19  ;;  %v225_v45 = vsel %vm224_vm4, %v223_v21, %v222_v20 }
  0x81   :  { %v1982_v25 = vrot.slane %v622_v23, 4  ;;  %v326_v26 = vrot.slane %v325_v24, 4  ;;  %239 = vrot.lane.b32.xlu1 %v229_v22, %s1895_s0  ;;  %v525_v48 = vmul.f32 %v522_v44, %v1932_v0  ;;  %v228_v49 = vmul.f32 %v225_v45, %v1932_v0 }
  0x82   :  { %v1379_v56 = vmul.f32 %v1958_v15, %v522_v44  ;;  %v1102_v58 = vmul.f32 %v1958_v15, %v225_v45  ;;  %v2105_v44 = vld [vmem:[%s2272_s1 + $0x18] sm:$0xff] }
  0x83   :  { %v629_v28 = vmul.f32 %v1982_v25, %v41_v14  ;;  %v332_v29 = vmul.f32 %v326_v26, %v41_v14  ;;  %v1197_v38 = vmul.f32 %v1973_v17, %v326_v26  ;;  %v328_v40 = vsel %vm327_vm2, %v326_v26, %v325_v24 }
  0x84   :  { %v816_v30 = vpop.permute.xlu0 %815  ;;  %v52_v33 = vpop.permute.xlu1 %51  ;;  %v331_v41 = vmul.f32 %v328_v40, %v1932_v0  ;;  %v625_v50 = vsel %vm624_vm5, %v1982_v25, %v622_v23  ;;  %v1196_v53 = vmul.f32 %v1958_v15, %v328_v40  ;;  %v531_v60 = vcombine.high %v525_v48, %v525_v48 }
  0x85   :  { %v1986_v31 = vrot.slane %v816_v30, 4  ;;  %639 = vrot.lane.b32.xlu1 %v629_v28, %s1896_s8  ;;  %342 = vrot.lane.b32.xlu0 %v332_v29, %s1897_s9  ;;  %v58_v37 = vsel %vm57_vm0, %v52_v33, %v54_v18  ;;  %v628_v52 = vmul.f32 %v625_v50, %v1932_v0  ;;  %v234_v61 = vcombine.high %v228_v49, %v228_v49 }
  0x86   :  { %v337_v59 = vcombine.high %v331_v41, %v331_v41  ;;  %v1473_v62 = vmul.f32 %v1958_v15, %v625_v50  ;;  %v1474_v63 = vmul.f32 %v1973_v17, %v1982_v25  ;;  %v1201_v1 = vcombine.high %v1196_v53, %v1196_v53 }
  0x87   :  { %v823_v34 = vmul.f32 %v1986_v31, %v41_v14  ;;  %v819_v55 = vsel %vm818_vm7, %v1986_v31, %v816_v30  ;;  %v1384_v3 = vcombine.high %v1379_v56, %v1379_v56  ;;  %v1107_v4 = vcombine.high %v1102_v58, %v1102_v58 }
  0x88   :  { %v56_v35 = vpop.permute.xlu0 %55  ;;  %v822_v57 = vmul.f32 %v819_v55, %v1932_v0  ;;  %v634_v0 = vcombine.high %v628_v52, %v628_v52  ;;  %v1656_v5 = vmul.f32 %v1958_v15, %v819_v55  ;;  %v1657_v6 = vmul.f32 %v1973_v17, %v1986_v31  ;;  %v434_v11 = vpop.permute.xlu1 %433  ;;  %v2126_v55 = vld [vmem:[%s2272_s1 + $0x28] sm:$0xff] }
  0x89   :  { %536 = vrot.lane.b32.xlu0 %v526_v32, %s1898_s10  ;;  %833 = vrot.lane.b32.xlu1 %v823_v34, %s1899_s11  ;;  %v59_v36 = vsel %vm57_vm0, %v54_v18, %v56_v35  ;;  %v1478_v7 = vcombine.high %v1473_v62, %v1473_v62 }
  0x8a   :  { %1773 = vmatprep.subr.msk.mxu0 %vm64_vm1, %v59_v36  ;;  %v828_v2 = vcombine.high %v822_v57, %v822_v57  ;;  %v1661_v10 = vcombine.high %v1656_v5, %v1656_v5 }
  0x8b   :  { %1774 = vmatpush1.msk.msra.mxu0 %vm64_vm1, %v58_v37 }
  0x8c   :  { %1775 = vmatmul.mubr.msk.f32.vlgmr.msra.gmra.mxu0 %vm60_vm6, %v2029_v54  ;;  %v432_v12 = vpop.permute.xlu0 %431  ;;  %v729_v14 = vpop.permute.xlu1 %728 }
  0x8d   :  { %1206 = vrot.lane.b32.xlu0 %v1197_v38, %s1897_s9  ;;  %1112 = vrot.lane.b32.xlu1 %v1103_v39, %s1895_s0 }
  0x8e   :  { %315 = vmatprep.mubr.f32.mxu0 %v1900_v46 }
  0x91   :  { %1389 = vrot.lane.b32.xlu0 %v1380_v42, %s1898_s10  ;;  %338 = vrot.lane.b32.xlu1 %v331_v41, %s1897_s9 }
  0x95   :  { %235 = vrot.lane.b32.xlu0 %v228_v49, %s1895_s0  ;;  %532 = vrot.lane.b32.xlu1 %v525_v48, %s1898_s10 }
  0x99   :  { %635 = vrot.lane.b32.xlu0 %v628_v52, %s1896_s8  ;;  %1202 = vrot.lane.b32.xlu1 %v1196_v53, %s1897_s9  ;;  %v2119_v53 = vld [vmem:[%s2272_s1 + $0x10] sm:$0xff] }
  0x9d   :  { %1385 = vrot.lane.b32.xlu1 %v1379_v56, %s1898_s10  ;;  %829 = vrot.lane.b32.xlu0 %v822_v57, %s1899_s11  ;;  %v437_v56 = vsel %vm435_vm11, %v432_v12, %v434_v11  ;;  %v1803_v11 = vld [vmem:[%s2272_s1 + $0x40] sm:$0xff] }
  0xa1   :  { %340 = vrot.lane.b32.xlu1 %v337_v59, %s1897_s9  ;;  %1108 = vrot.lane.b32.xlu0 %v1102_v58, %s1895_s0 }
  0xa5   :  { %534 = vrot.lane.b32.xlu1 %v531_v60, %s1898_s10  ;;  %237 = vrot.lane.b32.xlu0 %v234_v61, %s1895_s0 }
  0xa9   :  { %1483 = vrot.lane.b32.xlu1 %v1474_v63, %s1896_s8  ;;  %1479 = vrot.lane.b32.xlu0 %v1473_v62, %s1896_s8  ;;  %v2147_v62 = vld [vmem:[%s2272_s1 + $0x20] sm:$0xff] }
  0xad   :  { %1570 = vrot.lane.b32.xlu1 %v1965_v16, %s1894_s29  ;;  %637 = vrot.lane.b32.xlu0 %v634_v0, %s1896_s8  ;;  %v430_v16 = vpop.permute.xlu0 %429  ;;  %v2156_v0 = vld [vmem:[%s2272_s1 + $0x38] sm:$0xff] }
  0xae   :  { %v436_v60 = vsel %vm435_vm11, %v430_v16, %v432_v12 }
  0xb1   :  { %1204 = vrot.lane.b32.xlu1 %v1201_v1, %s1897_s9  ;;  %831 = vrot.lane.b32.xlu0 %v828_v2, %s1899_s11  ;;  %v731_v18 = vpop.permute.xlu0 %730 }
  0xb2   :  { %v734_v57 = vsel %vm732_vm12, %v729_v14, %v731_v18 }
  0xb5   :  { %1387 = vrot.lane.b32.xlu1 %v1384_v3, %s1898_s10  ;;  %1110 = vrot.lane.b32.xlu0 %v1107_v4, %s1895_s0  ;;  %v941_v20 = vpop.permute.xlu0 %940  ;;  %v930_v3 = vmul.f32 %v1958_v15, %v1943_v13 }
  0xb7   :  { %v1023_v8 = vcombine.high %v930_v3, %v930_v3 }
  0xb9   :  { %1568 = vrot.lane.b32.xlu1 %v1958_v15, %s1894_s29  ;;  %1572 = vrot.lane.b32.xlu0 %v1973_v17, %s1894_s29  ;;  %v727_v17 = vpop.permute.xlu1 %726  ;;  %v2076_v22 = vpop.permute.xlu0 %1293 }
  0xba   :  { %v733_v61 = vsel %vm732_vm12, %v727_v17, %v729_v14 }
  0xbd   :  { %1666 = vrot.lane.b32.xlu1 %v1657_v6, %s1899_s11  ;;  %1481 = vrot.lane.b32.xlu0 %v1478_v7, %s1896_s8  ;;  %v2072_v19 = vpop.permute.xlu1 %938  ;;  %v2080_v24 = vpop.permute.xlu0 %1291  ;;  %v2179_v7 = vld [vmem:[%s2272_s1 + $0x30] sm:$0xff]  ;;  %s1902_s1 = smov [#allocation2]  }
  0xbe   :  { %v943_v63 = vsel %vm57_vm0, %v2072_v19, %v941_v20  ;;  %s1760_s5 = sshll.u32 %s1902_s1, 4  ;;  %s1761_s5 = int_to_ptr.vmem [resolvable:$true] %s1760_s5 }
  0xbf   :  { %s1865_s6 = scalar_lea.vmem %s1761_s5, 512  ;;  %p1870_p1 = scmp.lt.s32.totalorder %s1761_s5, %s1761_s5 }
  0xc0   :  { %p1866_p0 = scmp.ne.s32.totalorder %s1761_s5, %s1865_s6  ;;  %p1871_p2 = scmp.lt.s32.totalorder %s1865_s6, %s1865_s6 }
  0xc1   :  { %1664 = vrot.lane.b32.xlu0 %v1661_v10, %s1899_s11  ;;  %920 = vperm.xlu1 %1861, %v39_v9   ;;  %v2074_v21 = vpop.permute.xlu1 %936 }
  0xc2   :  { %v942_v4 = vsel %vm57_vm0, %v2074_v21, %v2072_v19  ;;  %v1297_v21 = vsel %vm435_vm11, %v2080_v24, %v2076_v22  ;;  %p1872_p3 = por %p1871_p2, %p1870_p1 }
  0xc4   :  { %p1873_p4 = pnand %p1872_p3, %p1866_p0 }
  0xc5   :  { %1662 = vrot.lane.b32.xlu0 %v1656_v5, %s1899_s11  ;;  %v2078_v23 = vpop.permute.xlu1 %1295 }
  0xf3   :  { %v240_v25 = vpop.permute.xlu1 %239 }
  0xf7   :  { %v2082_v26 = vpop.permute.xlu1 %639  ;;  %v343_v27 = vpop.permute.xlu0 %342 }
  0xfb   :  { %v2084_v28 = vpop.permute.xlu1 %833  ;;  %v537_v29 = vpop.permute.xlu0 %536 }
  0xff   :  { %v2086_v30 = vpop.permute.xlu1 %1112  ;;  %v2088_v31 = vpop.permute.xlu0 %1206 }
 0x103   :  { %v339_v32 = vpop.permute.xlu1 %338  ;;  %v2090_v33 = vpop.permute.xlu0 %1389 }
 0x107   :  { %v533_v34 = vpop.permute.xlu1 %532  ;;  %v236_v35 = vpop.permute.xlu0 %235 }
 0x10b   :  { %v2092_v36 = vpop.permute.xlu1 %1202  ;;  %v636_v37 = vpop.permute.xlu0 %635 }
 0x10f   :  { %v2094_v38 = vpop.permute.xlu1 %1385  ;;  %v2096_v39 = vpop.permute.xlu0 %829 }
 0x113   :  { %v341_v40 = vpop.permute.xlu1 %340  ;;  %v2098_v41 = vpop.permute.xlu0 %1108 }
 0x114   :  { %v345_v42 = vsel %vm344_vm8, %v339_v32, %v341_v40  ;;  %v346_v43 = vsel %vm344_vm8, %v341_v40, %v343_v27 }
 0x115   :  { %1784 = vmatprep.subr.msk.mxu1 %vm64_vm1, %v346_v43 }
 0x116   :  { %1785 = vmatpush1.msk.msra.mxu1 %vm64_vm1, %v345_v42 }
 0x117   :  { %v535_v45 = vpop.permute.xlu1 %534  ;;  %v238_v47 = vpop.permute.xlu0 %237  ;;  %1786 = vmatmul.mubr.msk.f32.vlgmr.msra.gmra.mxu1 %vm60_vm6, %v2105_v44 }
 0x118   :  { %v539_v48 = vsel %vm538_vm9, %v533_v34, %v535_v45  ;;  %v540_v49 = vsel %vm538_vm9, %v535_v45, %v537_v29  ;;  %v242_v50 = vsel %vm241_vm10, %v236_v35, %v238_v47  ;;  %v243_v52 = vsel %vm241_vm10, %v238_v47, %v240_v25  ;;  %612 = vmatprep.mubr.f32.mxu1 %v1900_v46  ;;  %v215_v34 = vpop.f32.mrf.mxu1 }
 0x119   :  { %1780 = vmatprep.subr.msk.mxu0 %vm64_vm1, %v243_v52  ;;  %1792 = vmatprep.subr.msk.mxu1 %vm64_vm1, %v540_v49 }
 0x11a   :  { %1781 = vmatpush1.msk.msra.mxu0 %vm64_vm1, %v242_v50  ;;  %1793 = vmatpush1.msk.msra.mxu1 %vm64_vm1, %v539_v48 }
 0x11b   :  { %v2132_v58 = vpop.permute.xlu1 %1483  ;;  %1782 = vmatmul.mubr.msk.f32.vlgmr.msra.gmra.mxu0 %vm60_vm6, %v2119_v53  ;;  %1788 = vmatprep.subr.msk.mxu0 %vm64_vm1, %v437_v56  ;;  %v2137_v59 = vpop.permute.xlu0 %1479 }
 0x11c   :  { %1794 = vmatmul.mubr.msk.f32.vlgmr.msra.gmra.mxu1 %vm60_vm6, %v2126_v55  ;;  %1800 = vmatprep.subr.msk.mxu1 %vm64_vm1, %v734_v57 }
 0x11d   :  { %1789 = vmatpush1.msk.msra.mxu0 %vm64_vm1, %v436_v60  ;;  %1801 = vmatpush1.msk.msra.mxu1 %vm64_vm1, %v733_v61 }
 0x11e   :  { %1810 = vmatprep.subr.msk.mxu1 %vm64_vm1, %v943_v63  ;;  %509 = vmatprep.mubr.f32.mxu0 %v1900_v46 }
 0x11f   :  { %806 = vmatprep.mubr.f32.mxu1 %v1900_v46  ;;  %v2161_v1 = vpop.permute.xlu1 %1570  ;;  %1790 = vmatmul.mubr.msk.f32.vlgmr.msra.gmra.mxu0 %vm60_vm6, %v2147_v62  ;;  %v638_v2 = vpop.permute.xlu0 %637 }
 0x120   :  { %v642_v5 = vsel %vm641_vm13, %v636_v37, %v638_v2  ;;  %v643_v6 = vsel %vm641_vm13, %v638_v2, %v2082_v26  ;;  %1802 = vmatmul.mubr.msk.f32.vlgmr.msra.gmra.mxu1 %vm60_vm6, %v2156_v0  ;;  %715 = vmatprep.mubr.f32.mxu0 %v1900_v46 }
 0x121   :  { %1811 = vmatpush1.msk.msra.mxu1 %vm64_vm1, %v942_v4  ;;  %1796 = vmatprep.subr.msk.mxu0 %vm64_vm1, %v643_v6 }
 0x122   :  { %1797 = vmatpush1.msk.msra.mxu0 %vm64_vm1, %v642_v5  ;;  %1015 = vmatprep.mubr.f32.mxu1 %v1900_v46 }
 0x123   :  { %v1205_v13 = vpop.permute.xlu1 %1204  ;;  %1798 = vmatmul.mubr.msk.f32.vlgmr.msra.gmra.mxu0 %vm60_vm6, %v2179_v7  ;;  %v832_v15 = vpop.permute.xlu0 %831 }
 0x124   :  { %v836_v9 = vsel %vm835_vm14, %v2096_v39, %v832_v15  ;;  %v837_v10 = vsel %vm835_vm14, %v832_v15, %v2084_v28  ;;  %909 = vmatprep.mubr.f32.mxu0 %v1900_v46  ;;  %1812 = vmatmul.mubr.msk.f32.vlgmr.msra.gmra.mxu1 %vm60_vm6, %v2029_v54  ;;  %v1209_v16 = vsel %vm344_vm8, %v1205_v13, %v2088_v31 }
 0x125   :  { %1804 = vmatprep.subr.msk.mxu0 %vm64_vm1, %v837_v10  ;;  %1187 = vmatprep.mubr.f32.mxu1 %v1900_v46  ;;  %v1298_v54 = vsel %vm435_vm11, %v2076_v22, %v2078_v23  ;;  %v1208_v19 = vsel %vm344_vm8, %v2092_v36, %v1205_v13  ;;  %v217_v36 = vpop.f32.mrf.mxu1 }
 0x126   :  { %1805 = vmatpush1.msk.msra.mxu0 %vm64_vm1, %v836_v9 }
 0x127   :  { %v1388_v12 = vpop.permute.xlu1 %1387  ;;  %1806 = vmatmul.mubr.msk.f32.vlgmr.msra.gmra.mxu0 %vm60_vm6, %v1803_v11  ;;  %v1111_v14 = vpop.permute.xlu0 %1110  ;;  %1813 = vmatprep.subr.msk.mxu0 %vm64_vm1, %v1023_v8 }
 0x128   :  { %v1114_v17 = vsel %vm241_vm10, %v2098_v41, %v1111_v14  ;;  %v1115_v18 = vsel %vm241_vm10, %v1111_v14, %v2086_v30  ;;  %1814 = vmatpush1.msk.msra.mxu0 %vm64_vm1, %v930_v3  ;;  %1095 = vmatprep.mubr.f32.mxu0 %v1900_v46  ;;  %v1392_v23 = vsel %vm538_vm9, %v1388_v12, %v2090_v33 }
 0x129   :  { %1817 = vmatprep.subr.msk.mxu1 %vm64_vm1, %v1115_v18  ;;  %1821 = vmatprep.subr.msk.mxu0 %vm64_vm1, %v1209_v16 }
 0x12a   :  { %1818 = vmatpush1.msk.msra.mxu1 %vm64_vm1, %v1114_v17 }
 0x12b   :  { %v1573_v20 = vpop.permute.xlu0 %1572  ;;  %1815 = vmatmul.mubr.msk.f32.vlgmr.msra.gmra.mxu0 %vm60_vm6, %v2017_v51  ;;  %1825 = vmatprep.subr.msk.mxu1 %vm64_vm1, %v1298_v54  ;;  %v1569_v25 = vpop.permute.xlu1 %1568  ;;  %v1391_v51 = vsel %vm538_vm9, %v2094_v38, %v1388_v12 }
 0x12c   :  { %1822 = vmatpush1.msk.msra.mxu0 %vm64_vm1, %v1208_v19  ;;  %1819 = vmatmul.mubr.msk.f32.vlgmr.msra.gmra.mxu1 %vm60_vm6, %v2119_v53  ;;  %v1575_v24 = vsel %vm732_vm12, %v2161_v1, %v1573_v20  ;;  %v1574_v28 = vsel %vm732_vm12, %v1569_v25, %v2161_v1 }
 0x12d   :  { %1826 = vmatpush1.msk.msra.mxu1 %vm64_vm1, %v1297_v21  ;;  %1829 = vmatprep.subr.msk.mxu0 %vm64_vm1, %v1392_v23 }
 0x12e   :  { %1281 = vmatprep.mubr.f32.mxu0 %v1900_v46  ;;  %1370 = vmatprep.mubr.f32.mxu1 %v1900_v46 }
 0x12f   :  { %v1482_v22 = vpop.permute.xlu0 %1481  ;;  %1823 = vmatmul.mubr.msk.f32.vlgmr.msra.gmra.mxu0 %vm60_vm6, %v2105_v44  ;;  %v1667_v29 = vpop.permute.xlu1 %1666 }
 0x130   :  { %v1485_v26 = vsel %vm641_vm13, %v2137_v59, %v1482_v22  ;;  %v1486_v27 = vsel %vm641_vm13, %v1482_v22, %v2132_v58  ;;  %1830 = vmatpush1.msk.msra.mxu0 %vm64_vm1, %v1391_v51  ;;  %1827 = vmatmul.mubr.msk.f32.vlgmr.msra.gmra.mxu1 %vm60_vm6, %v2147_v62 }
 0x131   :  { %1837 = vmatprep.subr.msk.mxu0 %vm64_vm1, %v1575_v24  ;;  %1833 = vmatprep.subr.msk.mxu1 %vm64_vm1, %v1486_v27 }
 0x132   :  { %1464 = vmatprep.mubr.f32.mxu0 %v1900_v46  ;;  %1834 = vmatpush1.msk.msra.mxu1 %vm64_vm1, %v1485_v26 }
 0x133   :  { %v1665_v30 = vpop.permute.xlu0 %1664  ;;  %1831 = vmatmul.mubr.msk.f32.vlgmr.msra.gmra.mxu0 %vm60_vm6, %v2126_v55  ;;  %1558 = vmatprep.mubr.f32.mxu1 %v1900_v46 }
 0x134   :  { %v1669_v31 = vsel %vm835_vm14, %v1665_v30, %v1667_v29  ;;  %1838 = vmatpush1.msk.msra.mxu0 %vm64_vm1, %v1574_v28  ;;  %1835 = vmatmul.mubr.msk.f32.vlgmr.msra.gmra.mxu1 %vm60_vm6, %v2179_v7 }
 0x135   :  { %1841 = vmatprep.subr.msk.mxu1 %vm64_vm1, %v1669_v31  ;;  %1647 = vmatprep.mubr.f32.mxu0 %v1900_v46 }
 0x136   :  { %1741 = vmatprep.mubr.f32.mxu1 %v1900_v46 }
 0x137   :  { %v1663_v32 = vpop.permute.xlu0 %1662  ;;  %1839 = vmatmul.mubr.msk.f32.vlgmr.msra.gmra.mxu0 %vm60_vm6, %v2156_v0 }
 0x138   :  { %v1668_v33 = vsel %vm835_vm14, %v1663_v32, %v1665_v30 }
 0x139   :  { %1842 = vmatpush1.msk.msra.mxu1 %vm64_vm1, %v1668_v33 }
 0x13a   :  { %1843 = vmatmul.mubr.msk.f32.vlgmr.msra.gmra.mxu1 %vm60_vm6, %v1803_v11 }
 0x13c   :  { %v921_v3 = vpop.permute.xlu1 %920 }
 0x14c   :  { %v135_v35 = vpop.f32.mrf.mxu0 }
 0x14d   :  { %v216_v39 = vadd.f32 %v215_v34, %v135_v35 }
 0x14e   :  { %v137_v37 = vpop.f32.mrf.mxu0 }
 0x14f   :  { %v218_v42 = vadd.f32 %v217_v36, %v137_v37 }
 0x1d7   :  { %v420_v38 = vpop.f32.mrf.mxu1 }
 0x1d9   :  { %v422_v40 = vpop.f32.mrf.mxu1 }
 0x1db   :  { %v317_v41 = vpop.f32.mrf.mxu0 }
 0x1dc   :  { %v322_v46 = vadd.f32 %v317_v41, %v216_v39  ;;  %v614_v43 = vpop.f32.mrf.mxu1 }
 0x1dd   :  { %v319_v44 = vpop.f32.mrf.mxu0 }
 0x1de   :  { %v323_v45 = vadd.f32 %v319_v44, %v218_v42  ;;  %v425_v47 = vadd.f32 %v420_v38, %v322_v46  ;;  %v616_v48 = vpop.f32.mrf.mxu1 }
 0x1df   :  { %v511_v49 = vpop.f32.mrf.mxu0 }
 0x1e0   :  { %v426_v50 = vadd.f32 %v422_v40, %v323_v45  ;;  %v516_v52 = vadd.f32 %v511_v49, %v425_v47  ;;  %v808_v53 = vpop.f32.mrf.mxu1 }
 0x1e1   :  { %v513_v55 = vpop.f32.mrf.mxu0 }
 0x1e2   :  { %v517_v56 = vadd.f32 %v513_v55, %v426_v50  ;;  %v619_v57 = vadd.f32 %v614_v43, %v516_v52  ;;  %v810_v58 = vpop.f32.mrf.mxu1 }
 0x1e3   :  { %v717_v59 = vpop.f32.mrf.mxu0 }
 0x1e4   :  { %v620_v60 = vadd.f32 %v616_v48, %v517_v56  ;;  %v722_v61 = vadd.f32 %v717_v59, %v619_v57  ;;  %v1017_v63 = vpop.f32.mrf.mxu1 }
 0x1e5   :  { %v719_v62 = vpop.f32.mrf.mxu0 }
 0x1e6   :  { %v723_v0 = vadd.f32 %v719_v62, %v620_v60  ;;  %v813_v1 = vadd.f32 %v808_v53, %v722_v61  ;;  %v1019_v6 = vpop.f32.mrf.mxu1 }
 0x1e7   :  { %v911_v2 = vpop.f32.mrf.mxu0 }
 0x1e8   :  { %v814_v4 = vadd.f32 %v810_v58, %v723_v0  ;;  %v916_v5 = vadd.f32 %v911_v2, %v813_v1 }
 0x1e9   :  { %v913_v7 = vpop.f32.mrf.mxu0 }
 0x1ea   :  { %v917_v13 = vadd.f32 %v913_v7, %v814_v4  ;;  %v923_v15 = vadd.f32 %v921_v3, %v916_v5 }
 0x1eb   :  { %v1097_v8 = vpop.f32.mrf.mxu0 }
 0x1ec   :  { %v924_v9 = vadd.f32 %v921_v3, %v917_v13  ;;  %925 = vst [vmem:[#allocation2] sm:$0xff] %v923_v15  ;;  %v1098_v10 = vadd.f32 %v1097_v8, %v1017_v63  ;;  %v1189_v11 = vpop.f32.mrf.mxu1 }
 0x1ed   :  { %v1099_v12 = vpop.f32.mrf.mxu0 }
 0x1ee   :  { %926 = vst [vmem:[#allocation2 + $0x8] sm:$0xff] %v924_v9  ;;  %v1100_v14 = vadd.f32 %v1099_v12, %v1019_v6  ;;  %v1194_v16 = vadd.f32 %v1189_v11, %v1098_v10  ;;  %v1191_v17 = vpop.f32.mrf.mxu1 }
 0x1ef   :  { %v1283_v18 = vpop.f32.mrf.mxu0 }
 0x1f0   :  { %v1195_v54 = vadd.f32 %v1191_v17, %v1100_v14  ;;  %v1288_v19 = vadd.f32 %v1283_v18, %v1194_v16  ;;  %v1372_v20 = vpop.f32.mrf.mxu1 }
 0x1f1   :  { %v1285_v21 = vpop.f32.mrf.mxu0 }
 0x1f2   :  { %v1289_v23 = vadd.f32 %v1285_v21, %v1195_v54  ;;  %v1377_v25 = vadd.f32 %v1372_v20, %v1288_v19  ;;  %v1374_v51 = vpop.f32.mrf.mxu1 }
 0x1f3   :  { %v1466_v22 = vpop.f32.mrf.mxu0 }
 0x1f4   :  { %v1378_v24 = vadd.f32 %v1374_v51, %v1289_v23  ;;  %v1471_v26 = vadd.f32 %v1466_v22, %v1377_v25  ;;  %v1560_v27 = vpop.f32.mrf.mxu1 }
 0x1f5   :  { %v1468_v28 = vpop.f32.mrf.mxu0 }
 0x1f6   :  { %v1472_v29 = vadd.f32 %v1468_v28, %v1378_v24  ;;  %v1565_v30 = vadd.f32 %v1560_v27, %v1471_v26  ;;  %v1562_v31 = vpop.f32.mrf.mxu1 }
 0x1f7   :  { %v1649_v32 = vpop.f32.mrf.mxu0 }
 0x1f8   :  { %v1566_v33 = vadd.f32 %v1562_v31, %v1472_v29  ;;  %v1654_v34 = vadd.f32 %v1649_v32, %v1565_v30 }
 0x1f9   :  { %v1651_v35 = vpop.f32.mrf.mxu0 }
 0x1fa   :  { %v1655_v36 = vadd.f32 %v1651_v35, %v1566_v33  ;;  %v1743_v37 = vpop.f32.mrf.mxu1 }
 0x1fb   :  { %v1748_v38 = vadd.f32 %v1743_v37, %v1654_v34 }
 0x1fc   :  { %v1745_v39 = vpop.f32.mrf.mxu1 }
 0x1fd   :  { %v1750_v40 = vadd.f32 %v1748_v38, %v921_v3  ;;  %v1749_v41 = vadd.f32 %v1745_v39, %v1655_v36 }
 0x1ff   :  { %1753 = vst [vmem:[#allocation2 + $0x10] sm:$0xff] %v1750_v40  ;;  %v1751_v42 = vadd.f32 %v1749_v41, %v921_v3 }
 0x201   :  { %1754 = vst [vmem:[#allocation2 + $0x18] sm:$0xff] %v1751_v42 }
 0x202   :  { %1876 = shalt.err (!%p1873_p4)
}
 0x203   :  { %s1903_s7 = smov 256  }
 0x204   :  { %1766 = dma.vmem_to_hbm [thread:$0]  %s1761_s5, 512, %s2275_s4, [#allocation3], %s1903_s7, %s1903_s7, %s1891_s25  }
 0x205   :  { %1885 = dma.done.wait [#allocation3], 512  }
 0x206   :  { %1886 = vsyncadd [#allocation3], 4294966784 }
 0x207   :  { %1770 = vsyncpa [#allocation3], 1 }

</bundles_post_ra>
